<compile_context>
chip_gen: v6e
topology: v6e:2x2x1
jax: 0.10.0
libtpu: 0.0.40
codegen_flags: <defaults>
</compile_context>

<pallas_src>
import functools

import jax
import jax.numpy as jnp
from jax.experimental import pallas as pl
from jax.experimental.pallas import tpu as pltpu


# -----------------------------------------------------------------------------
# Pallas kernel: tiled (patches @ W_folded) + bias [+ residual] [+ ReLU]
# -----------------------------------------------------------------------------
def _matmul_bn_act_kernel(relu, has_residual, *refs):
    if has_residual:
        x_ref, w_ref, bias_ref, res_ref, o_ref, acc_ref = refs
    else:
        x_ref, w_ref, bias_ref, o_ref, acc_ref = refs

    k = pl.program_id(2)

    @pl.when(k == 0)
    def _():
        acc_ref[...] = jnp.zeros_like(acc_ref)

    acc_ref[...] += jnp.dot(x_ref[...], w_ref[...],
                            preferred_element_type=jnp.float32)

    @pl.when(k == pl.num_programs(2) - 1)
    def _():
        out = acc_ref[...] + bias_ref[...]
        if has_residual:
            out = out + res_ref[...].astype(jnp.float32)
        if relu:
            out = jnp.maximum(out, 0.0)
        o_ref[...] = out.astype(o_ref.dtype)


# -----------------------------------------------------------------------------
# Tiling helpers
# -----------------------------------------------------------------------------
def _round_up(x, m):
    return -(-x // m) * m


def _choose_tile(dim, pref, align):
    """Pick a tile size (multiple of `align`, about `pref`) and the padded dim."""
    d = _round_up(dim, align)
    if d <= pref:
        return d, d
    n = -(-d // pref)                       # number of tiles
    t = _round_up(-(-d // n), align)        # tile size
    return t, t * n


# -----------------------------------------------------------------------------
# Kernel wrapper (jitted; shapes + relu / residual-presence key the cache)
# -----------------------------------------------------------------------------
@functools.partial(jax.jit, static_argnames=("relu",))
def matmul_bn_act(patches, w_mat, bias, residual=None, relu=True):
    """patches: [M, K] (any float), w_mat: [K, N] bf16 (BN scale folded in),
       bias: [N] f32, residual: [M, N] or None."""
    M, K = patches.shape
    _, N = w_mat.shape
    has_res = residual is not None

    tm, Mp = _choose_tile(M, 256, 8)
    tk, Kp = _choose_tile(K, 512, 128)
    tn, Np = _choose_tile(N, 256, 128)

    x = jnp.pad(patches.astype(jnp.bfloat16), ((0, Mp - M), (0, Kp - K)))
    w = jnp.pad(w_mat.astype(jnp.bfloat16), ((0, Kp - K), (0, Np - N)))
    b = jnp.pad(bias.astype(jnp.float32), (0, Np - N)).reshape(1, Np)

    args = [x, w, b]
    in_specs = [
        pl.BlockSpec((tm, tk), lambda i, j, k: (i, k)),
        pl.BlockSpec((tk, tn), lambda i, j, k: (k, j)),
        pl.BlockSpec((1, tn), lambda i, j, k: (0, j)),
    ]
    if has_res:
        r = jnp.pad(residual.astype(jnp.bfloat16), ((0, Mp - M), (0, Np - N)))
        args.append(r)
        in_specs.append(pl.BlockSpec((tm, tn), lambda i, j, k: (i, j)))

    kernel = functools.partial(_matmul_bn_act_kernel, relu, has_res)
    grid = (Mp // tm, Np // tn, Kp // tk)

    out = pl.pallas_call(
        kernel,
        out_shape=jax.ShapeDtypeStruct((Mp, Np), jnp.bfloat16),
        grid_spec=pltpu.PrefetchScalarGridSpec(
            num_scalar_prefetch=0,
            grid=grid,
            in_specs=in_specs,
            out_specs=pl.BlockSpec((tm, tn), lambda i, j, k: (i, j)),
            scratch_shapes=[pltpu.VMEM((tm, tn), jnp.float32)],
        ),
        compiler_params=pltpu.CompilerParams(
            dimension_semantics=("parallel", "parallel", "arbitrary"),
            vmem_limit_bytes=32 * 1024 * 1024,
        ),
        cost_estimate=pl.CostEstimate(
            flops=2 * Mp * Kp * Np,
            transcendentals=0,
            bytes_accessed=2 * (Mp * Kp + Kp * Np + Mp * Np),
        ),
    )(*args)
    return out[:M, :N]


# -----------------------------------------------------------------------------
# Glue: im2col, conv+bn(+relu)(+residual), maxpool
# -----------------------------------------------------------------------------
def _im2col(x, kh, kw, stride, pad):
    """x: NHWC -> patches [N*Ho*Wo, C*kh*kw] with index = c*(kh*kw) + ky*kw + kx."""
    N, H, W, C = x.shape
    if kh == 1 and kw == 1 and stride == 1 and pad == 0:
        return x.reshape(N * H * W, C), (N, H, W)
    # TODO(synk): for 3x3 convs, loop the 9 taps inside the kernel (K-grid over
    # taps reading the padded NHWC tensor directly) to avoid materializing the
    # 9x im2col patches array in HBM.
    if pad > 0:
        x = jnp.pad(x, ((0, 0), (pad, pad), (pad, pad), (0, 0)))
    Ho = (H + 2 * pad - kh) // stride + 1
    Wo = (W + 2 * pad - kw) // stride + 1
    cols = []
    for ky in range(kh):
        for kx in range(kw):
            cols.append(
                x[:, ky:ky + stride * (Ho - 1) + 1:stride,
                     kx:kx + stride * (Wo - 1) + 1:stride, :])
    patches = jnp.stack(cols, axis=-1)                 # [N,Ho,Wo,C,kh*kw]
    patches = patches.reshape(N, Ho, Wo, C * kh * kw)  # matches torch weight order
    return patches.reshape(N * Ho * Wo, C * kh * kw), (N, Ho, Wo)


def conv_bn_act(x, p, stride, pad, relu=True, residual=None):
    """x: NHWC.  p: {'w_mat': [Cin*kh*kw, Cout] bf16, 'bias': [Cout] f32, 'kh','kw'}."""
    kh, kw = p["kh"], p["kw"]
    Cout = p["w_mat"].shape[1]
    patches, (N, Ho, Wo) = _im2col(x, kh, kw, stride, pad)
    res = residual.reshape(N * Ho * Wo, Cout) if residual is not None else None
    out = matmul_bn_act(patches, p["w_mat"], p["bias"], res, relu=relu)
    return out.reshape(N, Ho, Wo, Cout)


def maxpool2d(x, k=3, stride=2, pad=1):
    """Fused jnp.maximum tree over the 9 shifted windows (no [9,M,C] HBM stack)."""
    N, H, W, C = x.shape
    xp = jnp.pad(x, ((0, 0), (pad, pad), (pad, pad), (0, 0)),
                 constant_values=-jnp.inf)
    Ho = (H + 2 * pad - k) // stride + 1
    Wo = (W + 2 * pad - k) // stride + 1
    out = None
    for ky in range(k):
        for kx in range(k):
            win = xp[:, ky:ky + stride * (Ho - 1) + 1:stride,
                        kx:kx + stride * (Wo - 1) + 1:stride, :]
            out = win if out is None else jnp.maximum(out, win)
    return out


# -----------------------------------------------------------------------------
# Deterministic synthetic parameters (resnet50 architecture, inference-mode BN,
# BN scale pre-folded into the weight matrix, weights stored [K, Cout] bf16).
# -----------------------------------------------------------------------------
_BN_EPS = 1e-5


def _init_conv_bn(key, cin, cout, k):
    kw_, kg, kb, km, kv = jax.random.split(key, 5)
    fan_in = cin * k * k
    w = jax.random.normal(kw_, (cout, cin, k, k), jnp.float32) * jnp.sqrt(2.0 / fan_in)
    gamma = jax.random.uniform(kg, (cout,), jnp.float32, 0.5, 1.5)
    beta = jax.random.normal(kb, (cout,), jnp.float32) * 0.1
    mean = jax.random.normal(km, (cout,), jnp.float32) * 0.1
    var = jax.random.uniform(kv, (cout,), jnp.float32, 0.5, 1.5)
    scale = gamma / jnp.sqrt(var + _BN_EPS)
    bias = beta - mean * scale
    # Fold BN scale into weight columns; pre-transpose to [Cin*kh*kw, Cout].
    w_mat = (w.reshape(cout, cin * k * k) * scale[:, None]).T.astype(jnp.bfloat16)
    return {"w_mat": w_mat, "bias": bias, "kh": k, "kw": k}


def init_resnet50_params(key):
    keys = iter(jax.random.split(key, 256))
    params = {"stem": _init_conv_bn(next(keys), 3, 64, 7)}
    expansion = 4
    layer_cfg = [(64, 3, 1), (128, 4, 2), (256, 6, 2), (512, 3, 2)]  # resnet50
    inplanes = 64
    layers = []
    for planes, num_blocks, stride in layer_cfg:
        blocks = []
        for b in range(num_blocks):
            s = stride if b == 0 else 1
            block = {
                "stride": s,
                "conv1": _init_conv_bn(next(keys), inplanes, planes, 1),
                "conv2": _init_conv_bn(next(keys), planes, planes, 3),
                "conv3": _init_conv_bn(next(keys), planes, planes * expansion, 1),
            }
            if s != 1 or inplanes != planes * expansion:
                block["downsample"] = _init_conv_bn(next(keys), inplanes,
                                                    planes * expansion, 1)
            blocks.append(block)
            inplanes = planes * expansion
        layers.append(blocks)
    params["layers"] = layers
    return params


# -----------------------------------------------------------------------------
# Forward pass (mirrors ResNetBackbone.forward)
# -----------------------------------------------------------------------------
def _bottleneck(x, bp):
    s = bp["stride"]
    out = conv_bn_act(x, bp["conv1"], stride=1, pad=0, relu=True)
    out = conv_bn_act(out, bp["conv2"], stride=s, pad=1, relu=True)
    if "downsample" in bp:
        identity = conv_bn_act(x, bp["downsample"], stride=s, pad=0, relu=False)
    else:
        identity = x
    # conv3 + BN + residual add + ReLU fused in one Pallas kernel
    out = conv_bn_act(out, bp["conv3"], stride=1, pad=0, relu=True,
                      residual=identity)
    return out


def resnet_backbone_forward(params, x_nchw):
    x = jnp.transpose(x_nchw, (0, 2, 3, 1))                         # NCHW -> NHWC
    x = conv_bn_act(x, params["stem"], stride=2, pad=3, relu=True)  # conv1+bn1+relu
    x = maxpool2d(x, k=3, stride=2, pad=1)                          # maxpool
    feats = []
    for li, layer in enumerate(params["layers"]):
        for bp in layer:
            x = _bottleneck(x, bp)
        if li >= 1:                                                 # layer2..layer4
            feats.append(x)
    # NHWC -> NCHW f32 to match PyTorch output convention: [C3, C4, C5]
    return [jnp.transpose(f, (0, 3, 1, 2)).astype(jnp.float32) for f in feats]


# -----------------------------------------------------------------------------
if __name__ == "__main__":
    key = jax.random.PRNGKey(0)
    k_params, k_x = jax.random.split(key)

    params = init_resnet50_params(k_params)
    x = jax.random.normal(k_x, (2, 3, 32, 32), jnp.float32)   # NCHW like PyTorch

    feats = resnet_backbone_forward(params, x)
    feats = jax.block_until_ready(feats)

    assert feats[0].shape == (2, 512, 4, 4), feats[0].shape    # C3
    assert feats[1].shape == (2, 1024, 2, 2), feats[1].shape   # C4
    assert feats[2].shape == (2, 2048, 1, 1), feats[2].shape   # C5
    assert all(bool(jnp.all(jnp.isfinite(f))) for f in feats)
    print("KERNEL_OK")
</pallas_src>

<mosaic_0001>
module attributes {stable_mosaic.version = 11 : i64} {
  func.func @_matmul_bn_act_kernel(%arg0: i32, %arg1: i32, %arg2: i32, %arg3: memref<256x256xbf16, #tpu.memory_space<vmem>>, %arg4: memref<256x128xbf16, #tpu.memory_space<vmem>>, %arg5: memref<1x128xf32, #tpu.memory_space<vmem>>, %arg6: memref<256x128xbf16, #tpu.memory_space<vmem>>, %arg7: memref<256x128xf32, #tpu.memory_space<vmem>>) attributes {dimension_semantics = [#tpu.dimension_semantics<parallel>, #tpu.dimension_semantics<parallel>, #tpu.dimension_semantics<arbitrary>], iteration_bounds = array<i64: 2, 1, 1>, scalar_prefetch = 0 : i64, scratch_operands = 1 : i64, tpu.core_type = #tpu.core_type<tc>, window_params = [{transform_indices = @transform_0, window_bounds = array<i64: 256, 256>}, {transform_indices = @transform_1, window_bounds = array<i64: 256, 128>}, {transform_indices = @transform_2, window_bounds = array<i64: 1, 128>}, {transform_indices = @transform_3, window_bounds = array<i64: 256, 128>}]} {
    %c0_i32 = arith.constant 0 : i32
    %0 = arith.cmpi eq, %arg2, %c0_i32 : i32
    %1 = arith.extui %0 : i1 to i32
    %c0_i32_0 = arith.constant 0 : i32
    %2 = arith.cmpi ne, %1, %c0_i32_0 : i32
    scf.if %2 {
      %cst_10 = arith.constant 0.000000e+00 : f32
      %12 = vector.broadcast %cst_10 : f32 to vector<256x128xf32>
      %c0_11 = arith.constant 0 : index
      %c0_12 = arith.constant 0 : index
      %13 = vector.load %arg7[%c0_11, %c0_12] : memref<256x128xf32, #tpu.memory_space<vmem>>, vector<256x128xf32>
      tpu.vector_store %arg7[%c0_11, %c0_12], %12 {strides = array<i32>} : memref<256x128xf32, #tpu.memory_space<vmem>>, vector<256x128xf32>,
    } else {
    }
    %c0 = arith.constant 0 : index
    %c0_1 = arith.constant 0 : index
    %3 = vector.load %arg7[%c0, %c0_1] : memref<256x128xf32, #tpu.memory_space<vmem>>, vector<256x128xf32>
    %c0_2 = arith.constant 0 : index
    %c0_3 = arith.constant 0 : index
    %4 = vector.load %arg3[%c0_2, %c0_3] : memref<256x256xbf16, #tpu.memory_space<vmem>>, vector<256x256xbf16>
    %c0_4 = arith.constant 0 : index
    %c0_5 = arith.constant 0 : index
    %5 = vector.load %arg4[%c0_4, %c0_5] : memref<256x128xbf16, #tpu.memory_space<vmem>>, vector<256x128xbf16>
    %cst = arith.constant dense<0.000000e+00> : vector<256x128xf32>
    %6 = tpu.matmul %4, %5, %cst {dimension_numbers = #tpu.dot_dimension_numbers<[1], [0], [0], [1], [0, 0, 1, 1], [], []>} : vector<256x256xbf16>, vector<256x128xbf16>, vector<256x128xf32> -> vector<256x128xf32>
    %7 = arith.addf %3, %6 : vector<256x128xf32>
    %c0_6 = arith.constant 0 : index
    %c0_7 = arith.constant 0 : index
    %8 = vector.load %arg7[%c0_6, %c0_7] : memref<256x128xf32, #tpu.memory_space<vmem>>, vector<256x128xf32>
    tpu.vector_store %arg7[%c0_6, %c0_7], %7 {strides = array<i32>} : memref<256x128xf32, #tpu.memory_space<vmem>>, vector<256x128xf32>,
    %c0_i32_8 = arith.constant 0 : i32
    %9 = arith.cmpi eq, %arg2, %c0_i32_8 : i32
    %10 = arith.extui %9 : i1 to i32
    %c0_i32_9 = arith.constant 0 : i32
    %11 = arith.cmpi ne, %10, %c0_i32_9 : i32
    scf.if %11 {
      %c0_10 = arith.constant 0 : index
      %c0_11 = arith.constant 0 : index
      %12 = vector.load %arg7[%c0_10, %c0_11] : memref<256x128xf32, #tpu.memory_space<vmem>>, vector<256x128xf32>
      %c0_12 = arith.constant 0 : index
      %c0_13 = arith.constant 0 : index
      %13 = vector.load %arg5[%c0_12, %c0_13] : memref<1x128xf32, #tpu.memory_space<vmem>>, vector<1x128xf32>
      %14 = vector.broadcast %13 : vector<1x128xf32> to vector<256x128xf32>
      %15 = arith.addf %12, %14 : vector<256x128xf32>
      %cst_14 = arith.constant 0.000000e+00 : f32
      %16 = vector.broadcast %cst_14 : f32 to vector<256x128xf32>
      %17 = arith.maximumf %15, %16 : vector<256x128xf32>
      %18 = arith.truncf %17 : vector<256x128xf32> to vector<256x128xbf16>
      %c0_15 = arith.constant 0 : index
      %c0_16 = arith.constant 0 : index
      %19 = vector.load %arg6[%c0_15, %c0_16] : memref<256x128xbf16, #tpu.memory_space<vmem>>, vector<256x128xbf16>
      tpu.vector_store %arg6[%c0_15, %c0_16], %18 {strides = array<i32>} : memref<256x128xbf16, #tpu.memory_space<vmem>>, vector<256x128xbf16>,
    } else {
    }
    return
  }
  func.func @transform_0(%arg0: i32, %arg1: i32, %arg2: i32) -> (i32, i32) {
    %c0_i32 = arith.constant 0 : i32
    return %arg0, %arg2 : i32, i32
  }
  func.func @transform_1(%arg0: i32, %arg1: i32, %arg2: i32) -> (i32, i32) {
    %c0_i32 = arith.constant 0 : i32
    return %arg2, %arg1 : i32, i32
  }
  func.func @transform_2(%arg0: i32, %arg1: i32, %arg2: i32) -> (i32, i32) {
    %c0_i32 = arith.constant 0 : i32
    %c0_i32_0 = arith.constant 0 : i32
    return %c0_i32, %arg1 : i32, i32
  }
  func.func @transform_3(%arg0: i32, %arg1: i32, %arg2: i32) -> (i32, i32) {
    %c0_i32 = arith.constant 0 : i32
    return %arg0, %arg1 : i32, i32
  }
}

</mosaic_0001>

<bundles_post_ra>
// kernel: matmul_bn_act.1
= control target key start
LH: loop header
LB: loop body
LE: loop exit
PB: predicated region body
PF: predicated region fallthrough
CT: control target
= control target key end

     0   :  { %s1744_s12 = smov 0   ;;  %s1746_s13 = smov 0   ;;  %s1918_s0 = inlined_call_operand.vmem [shape: bf16[512,256], index: 0, kind: input, shape index: {}]   ;;  %s1919_s1 = inlined_call_operand.vmem [shape: bf16[256,128], index: 1, kind: input, shape index: {}]   ;;  %s1920_s2 = inlined_call_operand.vmem [shape: f32[1,128], index: 2, kind: input, shape index: {}]   ;;  %s1921_s3 = inlined_call_operand.vmem [shape: bf16[512,128], index: 3, kind: output, shape index: {}]  }
   0x1   :  { %s1748_s14 = smov 0  }
   0x2 LB: > { %s32_s15 = sadd.s32 1, %s1718_s13  ;;  %p1267_p0 = scmp.ge.s32.totalorder %s1722_s14, 1  ;;  %s1722_s14 = sphi %s1748_s14, %s13_s14   ;;  %s1718_s13 = sphi %s1746_s13, %s1923_s13   ;;  %s1714_s12 = sphi %s1744_s12, %s1922_s12  }
   0x3   : > { %p34_p1 = scmp.ge.s32.totalorder %s32_s15, 2  ;;  %p191_p2 = scmp.lt.s32.totalorder %s1722_s14, 3 }
   0x5   : > { %s1925_s15 = smov (%p34_p1, %s32_s15), 0  ;;  %p192_p3 = pnand %p1267_p0, %p191_p2 }
   0x6   : > { %s1268_s18 = sshll.u32 (!%p192_p3), %s1714_s12, 5 }
   0x7   : > { %195 = sbr.rel (%p192_p3) target bundleno = 309 (0x135), region = 32  ;;  %p236_p4 = scmp.lt.s32.totalorder (!%p192_p3), %s1268_s18, 63 }
   0xc   : > { %v1636_v0 = vld [vmem:[%s1919_s1 + $0x78] sm:$0xff]   ;;  %v1638_v2 = vld [vmem:[%s1919_s1 + $0x70] sm:$0xff]   ;;  %v1640_v4 = vld [vmem:[%s1919_s1 + $0x68] sm:$0xff]   ;;  %s1927_s18 = smov (!%p236_p4, %s1268_s18), 63 }
   0xd   : > { %v1637_v1 = vld [vmem:[%s1919_s1 + $0x38] sm:$0xff]   ;;  %1484 = vmatprep.subr.bf16.mxu0 %v1636_v0  ;;  %1596 = vmatprep.subr.bf16.mxu1 %v1636_v0  ;;  %v1639_v3 = vld [vmem:[%s1919_s1 + $0x30] sm:$0xff]   ;;  %v1641_v5 = vld [vmem:[%s1919_s1 + $0x28] sm:$0xff]   ;;  %s1356_s6 = sshll.u32 %s1927_s18, 3  ;;  %s1272_s5 = sshll.u32 %s1927_s18, 2 }
   0xe   : > { %1485 = vmatpush3.bf16.msra.mxu0 %v1637_v1  ;;  %1604 = vmatpush3.bf16.msra.mxu1 %v1637_v1  ;;  %v1642_v6 = vld [vmem:[%s1919_s1 + $0x60] sm:$0xff]   ;;  %v1644_v8 = vld [vmem:[%s1919_s1 + $0x58] sm:$0xff]   ;;  %s1795_s11 = scalar_lea.vmem %s1918_s0, %s1356_s6  ;;  %v1646_v10 = vld [vmem:[%s1919_s1 + $0x50] sm:$0xff]   ;;  %s1863_s8 = scalar_lea.vmem %s1921_s3, %s1272_s5 }
   0xf   : > { %1486 = vmatprep.subr.bf16.mxu0 %v1638_v2  ;;  %1597 = vmatprep.subr.bf16.mxu1 %v1638_v2  ;;  %v1643_v7 = vld [vmem:[%s1919_s1 + $0x20] sm:$0xff]   ;;  %v1645_v9 = vld [vmem:[%s1919_s1 + $0x18] sm:$0xff]   ;;  %v1647_v13 = vld [vmem:[%s1919_s1 + $0x10] sm:$0xff]  }
  0x10   : > { %v1654_v11 = vld [vmem:[%s1795_s11 + $0x4] ss:$8 sps:$4 sm:$0xff]   ;;  %v1652_v18 = vld [vmem:[%s1795_s11] ss:$8 sps:$4 sm:$0xff]   ;;  %v1658_v20 = vld [vmem:[%s1795_s11 + $0x14] ss:$8 sps:$4 sm:$0xff]  }
  0x11   : > { %v1657_v12 = vld [vmem:[%s1795_s11 + $0x84] ss:$8 sps:$4 sm:$0xff]   ;;  %688 = vmatprep.mubr.bf16.mxu0 %v1654_v11  ;;  %v1655_v19 = vld [vmem:[%s1795_s11 + $0x80] ss:$8 sps:$4 sm:$0xff]   ;;  %v1660_v21 = vld [vmem:[%s1795_s11 + $0x94] ss:$8 sps:$4 sm:$0xff]  }
  0x12   : > { %1487 = vmatpush3.bf16.msra.mxu0 %v1639_v3  ;;  %1605 = vmatpush3.bf16.msra.mxu1 %v1639_v3  ;;  %v1648_v14 = vld [vmem:[%s1919_s1 + $0x48] sm:$0xff]   ;;  %v1650_v16 = vld [vmem:[%s1919_s1 + $0x40] sm:$0xff]   ;;  %v1662_v22 = vld [vmem:[%s1795_s11 + $0x10] ss:$8 sps:$4 sm:$0xff]  }
  0x13   : > { %1488 = vmatprep.subr.bf16.mxu0 %v1640_v4  ;;  %1598 = vmatprep.subr.bf16.mxu1 %v1640_v4  ;;  %v1649_v15 = vld [vmem:[%s1919_s1 + $0x8] sm:$0xff]   ;;  %v1651_v17 = vld [vmem:[%s1919_s1] sm:$0xff]   ;;  %v1663_v23 = vld [vmem:[%s1795_s11 + $0x90] ss:$8 sps:$4 sm:$0xff]  }
  0x14   : > { %752 = vmatprep.mubr.bf16.mxu1 %v1657_v12  ;;  %v1664_v24 = vld [vmem:[%s1795_s11 + $0x24] ss:$8 sps:$4 sm:$0xff]   ;;  %v1668_v26 = vld [vmem:[%s1795_s11 + $0x20] ss:$8 sps:$4 sm:$0xff]   ;;  %v1670_v28 = vld [vmem:[%s1795_s11 + $0x34] ss:$8 sps:$4 sm:$0xff]  }
  0x15   : > { %v1666_v25 = vld [vmem:[%s1795_s11 + $0xa4] ss:$8 sps:$4 sm:$0xff]   ;;  %v1669_v27 = vld [vmem:[%s1795_s11 + $0xa0] ss:$8 sps:$4 sm:$0xff]   ;;  %v1672_v29 = vld [vmem:[%s1795_s11 + $0xb4] ss:$8 sps:$4 sm:$0xff]  }
  0x16   : > { %1489 = vmatpush3.bf16.msra.mxu0 %v1641_v5  ;;  %1606 = vmatpush3.bf16.msra.mxu1 %v1641_v5  ;;  %v1674_v30 = vld [vmem:[%s1795_s11 + $0x30] ss:$8 sps:$4 sm:$0xff]   ;;  %v1676_v32 = vld [vmem:[%s1795_s11 + $0x44] ss:$8 sps:$4 sm:$0xff]   ;;  %v1680_v34 = vld [vmem:[%s1795_s11 + $0x40] ss:$8 sps:$4 sm:$0xff]  }
  0x17   : > { %1490 = vmatprep.subr.bf16.mxu0 %v1642_v6  ;;  %1599 = vmatprep.subr.bf16.mxu1 %v1642_v6  ;;  %v1675_v31 = vld [vmem:[%s1795_s11 + $0xb0] ss:$8 sps:$4 sm:$0xff]   ;;  %v1678_v33 = vld [vmem:[%s1795_s11 + $0xc4] ss:$8 sps:$4 sm:$0xff]   ;;  %v1681_v35 = vld [vmem:[%s1795_s11 + $0xc0] ss:$8 sps:$4 sm:$0xff]  }
  0x18   : > { %v1682_v36 = vld [vmem:[%s1795_s11 + $0x54] ss:$8 sps:$4 sm:$0xff]   ;;  %v1686_v38 = vld [vmem:[%s1795_s11 + $0x50] ss:$8 sps:$4 sm:$0xff]   ;;  %v1688_v40 = vld [vmem:[%s1795_s11 + $0x64] ss:$8 sps:$4 sm:$0xff]  }
  0x19   : > { %v1684_v37 = vld [vmem:[%s1795_s11 + $0xd4] ss:$8 sps:$4 sm:$0xff]   ;;  %v1687_v39 = vld [vmem:[%s1795_s11 + $0xd0] ss:$8 sps:$4 sm:$0xff]   ;;  %v1690_v41 = vld [vmem:[%s1795_s11 + $0xe4] ss:$8 sps:$4 sm:$0xff]  }
  0x1a   : > { %1491 = vmatpush3.bf16.msra.mxu0 %v1643_v7  ;;  %1607 = vmatpush3.bf16.msra.mxu1 %v1643_v7  ;;  %v1692_v42 = vld [vmem:[%s1795_s11 + $0x60] ss:$8 sps:$4 sm:$0xff]   ;;  %v1694_v44 = vld [vmem:[%s1795_s11 + $0x74] ss:$8 sps:$4 sm:$0xff]   ;;  %v1698_v46 = vld [vmem:[%s1795_s11 + $0x70] ss:$8 sps:$4 sm:$0xff]  }
  0x1b   : > { %1492 = vmatprep.subr.bf16.mxu0 %v1644_v8  ;;  %1600 = vmatprep.subr.bf16.mxu1 %v1644_v8  ;;  %v1693_v43 = vld [vmem:[%s1795_s11 + $0xe0] ss:$8 sps:$4 sm:$0xff]   ;;  %v1696_v45 = vld [vmem:[%s1795_s11 + $0xf4] ss:$8 sps:$4 sm:$0xff]   ;;  %v1699_v47 = vld [vmem:[%s1795_s11 + $0xf0] ss:$8 sps:$4 sm:$0xff]  }
  0x1c   : > { %v1853_v53 = vld [vmem:[%s1920_s2] ss:$0 sm:$0xff] }
  0x1e   : > { %1493 = vmatpush3.bf16.msra.mxu0 %v1645_v9  ;;  %1608 = vmatpush3.bf16.msra.mxu1 %v1645_v9 }
  0x1f   : > { %1494 = vmatprep.subr.bf16.mxu0 %v1646_v10  ;;  %1601 = vmatprep.subr.bf16.mxu1 %v1646_v10 }
  0x22   : > { %1495 = vmatpush3.bf16.msra.mxu0 %v1647_v13  ;;  %1609 = vmatpush3.bf16.msra.mxu1 %v1647_v13 }
  0x23   : > { %1496 = vmatprep.subr.bf16.mxu0 %v1648_v14  ;;  %1602 = vmatprep.subr.bf16.mxu1 %v1648_v14 }
  0x26   : > { %1497 = vmatpush3.bf16.msra.mxu0 %v1649_v15  ;;  %1610 = vmatpush3.bf16.msra.mxu1 %v1649_v15 }
  0x27   : > { %1498 = vmatprep.subr.bf16.mxu0 %v1650_v16  ;;  %1603 = vmatprep.subr.bf16.mxu1 %v1650_v16 }
  0x2a   : > { %1499 = vmatpush3.bf16.msra.mxu0 %v1651_v17  ;;  %1611 = vmatpush3.bf16.msra.mxu1 %v1651_v17 }
  0x2d   : > { %689 = vmatmul.mubr.bf16.vlgmr.msra.gmra.mxu0 %v1652_v18  ;;  %753 = vmatmul.mubr.bf16.vlgmr.msra.gmra.mxu1 %v1655_v19 }
  0x2e   : > { %696 = vmatprep.mubr.bf16.mxu0 %v1658_v20  ;;  %760 = vmatprep.mubr.bf16.mxu1 %v1660_v21 }
  0x35   : > { %697 = vmatmul.mubr.bf16.gmra.mxu0 %v1662_v22  ;;  %761 = vmatmul.mubr.bf16.gmra.mxu1 %v1663_v23 }
  0x36   : > { %704 = vmatprep.mubr.bf16.mxu0 %v1664_v24  ;;  %768 = vmatprep.mubr.bf16.mxu1 %v1666_v25 }
  0x3d   : > { %705 = vmatmul.mubr.bf16.gmra.mxu0 %v1668_v26  ;;  %769 = vmatmul.mubr.bf16.gmra.mxu1 %v1669_v27 }
  0x3e   : > { %712 = vmatprep.mubr.bf16.mxu0 %v1670_v28  ;;  %776 = vmatprep.mubr.bf16.mxu1 %v1672_v29 }
  0x45   : > { %713 = vmatmul.mubr.bf16.gmra.mxu0 %v1674_v30  ;;  %777 = vmatmul.mubr.bf16.gmra.mxu1 %v1675_v31 }
  0x46   : > { %720 = vmatprep.mubr.bf16.mxu0 %v1676_v32  ;;  %784 = vmatprep.mubr.bf16.mxu1 %v1678_v33 }
  0x4d   : > { %721 = vmatmul.mubr.bf16.gmra.mxu0 %v1680_v34  ;;  %785 = vmatmul.mubr.bf16.gmra.mxu1 %v1681_v35 }
  0x4e   : > { %728 = vmatprep.mubr.bf16.mxu0 %v1682_v36  ;;  %792 = vmatprep.mubr.bf16.mxu1 %v1684_v37 }
  0x55   : > { %729 = vmatmul.mubr.bf16.gmra.mxu0 %v1686_v38  ;;  %793 = vmatmul.mubr.bf16.gmra.mxu1 %v1687_v39 }
  0x56   : > { %736 = vmatprep.mubr.bf16.mxu0 %v1688_v40  ;;  %800 = vmatprep.mubr.bf16.mxu1 %v1690_v41 }
  0x5d   : > { %737 = vmatmul.mubr.bf16.gmra.mxu0 %v1692_v42  ;;  %801 = vmatmul.mubr.bf16.gmra.mxu1 %v1693_v43 }
  0x5e   : > { %744 = vmatprep.mubr.bf16.mxu0 %v1694_v44  ;;  %808 = vmatprep.mubr.bf16.mxu1 %v1696_v45 }
  0x65   : > { %745 = vmatmul.mubr.bf16.gmra.mxu0 %v1698_v46  ;;  %809 = vmatmul.mubr.bf16.gmra.mxu1 %v1699_v47 }
  0xed   : > { %v1500_v48 = vpop.f32.mrf.mxu0  ;;  %v1548_v49 = vpop.f32.mrf.mxu1 }
  0xef   : > { %v1501_v50 = vpop.f32.mrf.mxu0  ;;  %v1549_v51 = vpop.f32.mrf.mxu1 }
  0xf0   : > { %v1502_v52 = vadd.f32 %v1501_v50, %v1500_v48  ;;  %v1550_v54 = vadd.f32 %v1549_v51, %v1548_v49 }
  0xf1   : > { %v1503_v55 = vpop.f32.mrf.mxu0  ;;  %v1551_v56 = vpop.f32.mrf.mxu1 }
  0xf2   : > { %v923_v57 = vadd.f32 %v1502_v52, %v1853_v53  ;;  %v939_v58 = vadd.f32 %v1550_v54, %v1853_v53 }
  0xf3   : > { %v1504_v59 = vpop.f32.mrf.mxu0  ;;  %v1552_v60 = vpop.f32.mrf.mxu1 }
  0xf4   : > { %v1505_v61 = vadd.f32 %v1504_v59, %v1503_v55  ;;  %v1553_v62 = vadd.f32 %v1552_v60, %v1551_v56  ;;  %v955_v3 = vmax.f32 %v923_v57, 0.0  ;;  %v971_v4 = vmax.f32 %v939_v58, 0.0 }
  0xf5   : > { %v1506_v63 = vpop.f32.mrf.mxu0  ;;  %v1554_v0 = vpop.f32.mrf.mxu1 }
  0xf6   : > { %v924_v1 = vadd.f32 %v1505_v61, %v1853_v53  ;;  %v940_v2 = vadd.f32 %v1553_v62, %v1853_v53 }
  0xf7   : > { %v1507_v5 = vpop.f32.mrf.mxu0  ;;  %v1555_v6 = vpop.f32.mrf.mxu1 }
  0xf8   : > { %v956_v7 = vmax.f32 %v924_v1, 0.0  ;;  %v972_v8 = vmax.f32 %v940_v2, 0.0  ;;  %v1508_v9 = vadd.f32 %v1507_v5, %v1506_v63  ;;  %v1556_v10 = vadd.f32 %v1555_v6, %v1554_v0 }
  0xf9   : > { %v1509_v11 = vpop.f32.mrf.mxu0  ;;  %v1557_v12 = vpop.f32.mrf.mxu1 }
  0xfa   : > { %v1392_v13 = vpack.c.bf16 %v956_v7, %v955_v3  ;;  %v1432_v14 = vpack.c.bf16 %v972_v8, %v971_v4  ;;  %v925_v15 = vadd.f32 %v1508_v9, %v1853_v53  ;;  %v941_v16 = vadd.f32 %v1556_v10, %v1853_v53 }
  0xfb   : > { %v1510_v17 = vpop.f32.mrf.mxu0  ;;  %v1558_v18 = vpop.f32.mrf.mxu1 }
  0xfc   : > { %1393 = vst [vmem:[%s1863_s8] sm:$0xff] %v1392_v13   ;;  %1476 = vst [vmem:[%s1863_s8 + $0x40] sm:$0xff] %v1432_v14   ;;  %v1511_v19 = vadd.f32 %v1510_v17, %v1509_v11  ;;  %v1559_v20 = vadd.f32 %v1558_v18, %v1557_v12  ;;  %v957_v25 = vmax.f32 %v925_v15, 0.0  ;;  %v973_v26 = vmax.f32 %v941_v16, 0.0 }
  0xfd   : > { %v1512_v21 = vpop.f32.mrf.mxu0  ;;  %v1560_v22 = vpop.f32.mrf.mxu1 }
  0xfe   : > { %v926_v23 = vadd.f32 %v1511_v19, %v1853_v53  ;;  %v942_v24 = vadd.f32 %v1559_v20, %v1853_v53 }
  0xff   : > { %v1513_v27 = vpop.f32.mrf.mxu0  ;;  %v1561_v28 = vpop.f32.mrf.mxu1 }
 0x100   : > { %v958_v29 = vmax.f32 %v926_v23, 0.0  ;;  %v974_v30 = vmax.f32 %v942_v24, 0.0  ;;  %v1514_v31 = vadd.f32 %v1513_v27, %v1512_v21  ;;  %v1562_v32 = vadd.f32 %v1561_v28, %v1560_v22 }
 0x101   : > { %v1515_v33 = vpop.f32.mrf.mxu0  ;;  %v1563_v34 = vpop.f32.mrf.mxu1 }
 0x102   : > { %v1397_v35 = vpack.c.bf16 %v958_v29, %v957_v25  ;;  %v1437_v36 = vpack.c.bf16 %v974_v30, %v973_v26  ;;  %v927_v37 = vadd.f32 %v1514_v31, %v1853_v53  ;;  %v943_v38 = vadd.f32 %v1562_v32, %v1853_v53 }
 0x103   : > { %v1516_v39 = vpop.f32.mrf.mxu0  ;;  %v1564_v40 = vpop.f32.mrf.mxu1 }
 0x104   : > { %1469 = vst [vmem:[%s1863_s8 + $0x8] sm:$0xff] %v1397_v35   ;;  %1477 = vst [vmem:[%s1863_s8 + $0x48] sm:$0xff] %v1437_v36   ;;  %v1517_v41 = vadd.f32 %v1516_v39, %v1515_v33  ;;  %v1565_v42 = vadd.f32 %v1564_v40, %v1563_v34  ;;  %v959_v47 = vmax.f32 %v927_v37, 0.0  ;;  %v975_v48 = vmax.f32 %v943_v38, 0.0 }
 0x105   : > { %v1518_v43 = vpop.f32.mrf.mxu0  ;;  %v1566_v44 = vpop.f32.mrf.mxu1 }
 0x106   : > { %v928_v45 = vadd.f32 %v1517_v41, %v1853_v53  ;;  %v944_v46 = vadd.f32 %v1565_v42, %v1853_v53 }
 0x107   : > { %v1519_v49 = vpop.f32.mrf.mxu0  ;;  %v1567_v50 = vpop.f32.mrf.mxu1 }
 0x108   : > { %v960_v51 = vmax.f32 %v928_v45, 0.0  ;;  %v976_v52 = vmax.f32 %v944_v46, 0.0  ;;  %v1520_v54 = vadd.f32 %v1519_v49, %v1518_v43  ;;  %v1568_v55 = vadd.f32 %v1567_v50, %v1566_v44 }
 0x109   : > { %v1521_v56 = vpop.f32.mrf.mxu0  ;;  %v1569_v57 = vpop.f32.mrf.mxu1 }
 0x10a   : > { %v1402_v58 = vpack.c.bf16 %v960_v51, %v959_v47  ;;  %v1442_v59 = vpack.c.bf16 %v976_v52, %v975_v48  ;;  %v929_v60 = vadd.f32 %v1520_v54, %v1853_v53  ;;  %v945_v61 = vadd.f32 %v1568_v55, %v1853_v53 }
 0x10b   : > { %v1522_v62 = vpop.f32.mrf.mxu0  ;;  %v1570_v63 = vpop.f32.mrf.mxu1 }
 0x10c   : > { %1470 = vst [vmem:[%s1863_s8 + $0x10] sm:$0xff] %v1402_v58   ;;  %1478 = vst [vmem:[%s1863_s8 + $0x50] sm:$0xff] %v1442_v59   ;;  %v1523_v0 = vadd.f32 %v1522_v62, %v1521_v56  ;;  %v1571_v1 = vadd.f32 %v1570_v63, %v1569_v57  ;;  %v961_v6 = vmax.f32 %v929_v60, 0.0  ;;  %v977_v7 = vmax.f32 %v945_v61, 0.0 }
 0x10d   : > { %v1524_v2 = vpop.f32.mrf.mxu0  ;;  %v1572_v3 = vpop.f32.mrf.mxu1 }
 0x10e   : > { %v930_v4 = vadd.f32 %v1523_v0, %v1853_v53  ;;  %v946_v5 = vadd.f32 %v1571_v1, %v1853_v53 }
 0x10f   : > { %v1525_v8 = vpop.f32.mrf.mxu0  ;;  %v1573_v9 = vpop.f32.mrf.mxu1 }
 0x110   : > { %v962_v10 = vmax.f32 %v930_v4, 0.0  ;;  %v978_v11 = vmax.f32 %v946_v5, 0.0  ;;  %v1526_v12 = vadd.f32 %v1525_v8, %v1524_v2  ;;  %v1574_v13 = vadd.f32 %v1573_v9, %v1572_v3 }
 0x111   : > { %v1527_v14 = vpop.f32.mrf.mxu0  ;;  %v1575_v15 = vpop.f32.mrf.mxu1 }
 0x112   : > { %v1407_v16 = vpack.c.bf16 %v962_v10, %v961_v6  ;;  %v1447_v17 = vpack.c.bf16 %v978_v11, %v977_v7  ;;  %v931_v18 = vadd.f32 %v1526_v12, %v1853_v53  ;;  %v947_v19 = vadd.f32 %v1574_v13, %v1853_v53 }
 0x113   : > { %v1528_v20 = vpop.f32.mrf.mxu0  ;;  %v1576_v21 = vpop.f32.mrf.mxu1 }
 0x114   : > { %1471 = vst [vmem:[%s1863_s8 + $0x18] sm:$0xff] %v1407_v16   ;;  %1479 = vst [vmem:[%s1863_s8 + $0x58] sm:$0xff] %v1447_v17   ;;  %v1529_v22 = vadd.f32 %v1528_v20, %v1527_v14  ;;  %v1577_v23 = vadd.f32 %v1576_v21, %v1575_v15  ;;  %v963_v28 = vmax.f32 %v931_v18, 0.0  ;;  %v979_v29 = vmax.f32 %v947_v19, 0.0 }
 0x115   : > { %v1530_v24 = vpop.f32.mrf.mxu0  ;;  %v1578_v25 = vpop.f32.mrf.mxu1 }
 0x116   : > { %v932_v26 = vadd.f32 %v1529_v22, %v1853_v53  ;;  %v948_v27 = vadd.f32 %v1577_v23, %v1853_v53 }
 0x117   : > { %v1531_v30 = vpop.f32.mrf.mxu0  ;;  %v1579_v31 = vpop.f32.mrf.mxu1 }
 0x118   : > { %v964_v32 = vmax.f32 %v932_v26, 0.0  ;;  %v980_v33 = vmax.f32 %v948_v27, 0.0  ;;  %v1532_v34 = vadd.f32 %v1531_v30, %v1530_v24  ;;  %v1580_v35 = vadd.f32 %v1579_v31, %v1578_v25 }
 0x119   : > { %v1533_v36 = vpop.f32.mrf.mxu0  ;;  %v1581_v37 = vpop.f32.mrf.mxu1 }
 0x11a   : > { %v1412_v38 = vpack.c.bf16 %v964_v32, %v963_v28  ;;  %v1452_v39 = vpack.c.bf16 %v980_v33, %v979_v29  ;;  %v933_v40 = vadd.f32 %v1532_v34, %v1853_v53  ;;  %v949_v41 = vadd.f32 %v1580_v35, %v1853_v53 }
 0x11b   : > { %v1534_v42 = vpop.f32.mrf.mxu0  ;;  %v1582_v43 = vpop.f32.mrf.mxu1 }
 0x11c   : > { %1472 = vst [vmem:[%s1863_s8 + $0x20] sm:$0xff] %v1412_v38   ;;  %1480 = vst [vmem:[%s1863_s8 + $0x60] sm:$0xff] %v1452_v39   ;;  %v1535_v44 = vadd.f32 %v1534_v42, %v1533_v36  ;;  %v1583_v45 = vadd.f32 %v1582_v43, %v1581_v37  ;;  %v965_v50 = vmax.f32 %v933_v40, 0.0  ;;  %v981_v51 = vmax.f32 %v949_v41, 0.0 }
 0x11d   : > { %v1536_v46 = vpop.f32.mrf.mxu0  ;;  %v1584_v47 = vpop.f32.mrf.mxu1 }
 0x11e   : > { %v934_v48 = vadd.f32 %v1535_v44, %v1853_v53  ;;  %v950_v49 = vadd.f32 %v1583_v45, %v1853_v53 }
 0x11f   : > { %v1537_v52 = vpop.f32.mrf.mxu0  ;;  %v1585_v54 = vpop.f32.mrf.mxu1 }
 0x120   : > { %v966_v55 = vmax.f32 %v934_v48, 0.0  ;;  %v982_v56 = vmax.f32 %v950_v49, 0.0  ;;  %v1538_v57 = vadd.f32 %v1537_v52, %v1536_v46  ;;  %v1586_v58 = vadd.f32 %v1585_v54, %v1584_v47 }
 0x121   : > { %v1539_v59 = vpop.f32.mrf.mxu0  ;;  %v1587_v60 = vpop.f32.mrf.mxu1 }
 0x122   : > { %v1417_v61 = vpack.c.bf16 %v966_v55, %v965_v50  ;;  %v1457_v62 = vpack.c.bf16 %v982_v56, %v981_v51  ;;  %v935_v63 = vadd.f32 %v1538_v57, %v1853_v53  ;;  %v951_v0 = vadd.f32 %v1586_v58, %v1853_v53 }
 0x123   : > { %v1540_v1 = vpop.f32.mrf.mxu0  ;;  %v1588_v2 = vpop.f32.mrf.mxu1 }
 0x124   : > { %1473 = vst [vmem:[%s1863_s8 + $0x28] sm:$0xff] %v1417_v61   ;;  %1481 = vst [vmem:[%s1863_s8 + $0x68] sm:$0xff] %v1457_v62   ;;  %v1541_v3 = vadd.f32 %v1540_v1, %v1539_v59  ;;  %v1589_v4 = vadd.f32 %v1588_v2, %v1587_v60  ;;  %v967_v9 = vmax.f32 %v935_v63, 0.0  ;;  %v983_v10 = vmax.f32 %v951_v0, 0.0 }
 0x125   : > { %v1542_v5 = vpop.f32.mrf.mxu0  ;;  %v1590_v6 = vpop.f32.mrf.mxu1 }
 0x126   : > { %v936_v7 = vadd.f32 %v1541_v3, %v1853_v53  ;;  %v952_v8 = vadd.f32 %v1589_v4, %v1853_v53 }
 0x127   : > { %v1543_v11 = vpop.f32.mrf.mxu0  ;;  %v1591_v12 = vpop.f32.mrf.mxu1 }
 0x128   : > { %v968_v13 = vmax.f32 %v936_v7, 0.0  ;;  %v984_v14 = vmax.f32 %v952_v8, 0.0  ;;  %v1544_v15 = vadd.f32 %v1543_v11, %v1542_v5  ;;  %v1592_v16 = vadd.f32 %v1591_v12, %v1590_v6 }
 0x129   : > { %v1545_v17 = vpop.f32.mrf.mxu0  ;;  %v1593_v18 = vpop.f32.mrf.mxu1 }
 0x12a   : > { %v1422_v19 = vpack.c.bf16 %v968_v13, %v967_v9  ;;  %v1462_v20 = vpack.c.bf16 %v984_v14, %v983_v10  ;;  %v937_v23 = vadd.f32 %v1544_v15, %v1853_v53  ;;  %v953_v24 = vadd.f32 %v1592_v16, %v1853_v53 }
 0x12b   : > { %v1546_v21 = vpop.f32.mrf.mxu0  ;;  %v1594_v22 = vpop.f32.mrf.mxu1 }
 0x12c   : > { %1474 = vst [vmem:[%s1863_s8 + $0x30] sm:$0xff] %v1422_v19   ;;  %1482 = vst [vmem:[%s1863_s8 + $0x70] sm:$0xff] %v1462_v20   ;;  %v1547_v25 = vadd.f32 %v1546_v21, %v1545_v17  ;;  %v1595_v26 = vadd.f32 %v1594_v22, %v1593_v18  ;;  %v969_v29 = vmax.f32 %v937_v23, 0.0  ;;  %v985_v30 = vmax.f32 %v953_v24, 0.0 }
 0x12e   : > { %v938_v27 = vadd.f32 %v1547_v25, %v1853_v53  ;;  %v954_v28 = vadd.f32 %v1595_v26, %v1853_v53 }
 0x130   : > { %v970_v31 = vmax.f32 %v938_v27, 0.0  ;;  %v986_v32 = vmax.f32 %v954_v28, 0.0 }
 0x132   : > { %v1427_v33 = vpack.c.bf16 %v970_v31, %v969_v29  ;;  %v1467_v34 = vpack.c.bf16 %v986_v32, %v985_v30 }
 0x134   : > { %1475 = vst [vmem:[%s1863_s8 + $0x38] sm:$0xff] %v1427_v33   ;;  %1483 = vst [vmem:[%s1863_s8 + $0x78] sm:$0xff] %v1467_v34  }
 0x135 PF: > { %s13_s14 = sadd.s32 1, %s1722_s14   ;;  %s1922_s12 = smov %s1718_s13 }
 0x136   : > { %p10_p5 = scmp.ge.s32.totalorder %s13_s14, 4   ;;  %s1923_s13 = smov %s1925_s15 }
 0x138   :  { %12 = sbr.rel (!%p10_p5) target bundleno = 2 (0x2), region = 76 }

</bundles_post_ra>
